<compile_context>
chip_gen: v7x
topology: tpu7x:2x2x1
jax: 0.10.0
libtpu: 0.0.40
codegen_flags: <defaults>
</compile_context>

<pallas_src>
import jax
import jax.numpy as jnp
from jax.experimental import pallas as pl
from jax.experimental.pallas import tpu as pltpu


def _round_up(x, m):
    return ((x + m - 1) // m) * m


# ---------------------------------------------------------------------------
# Kernels
# ---------------------------------------------------------------------------
def unembed_kernel_single(x_ref, w_ref, b_ref, o_ref):
    # x_ref: (tm, K), w_ref: (K, tn), b_ref: (1, tn), o_ref: (tm, tn)
    # Full reduction in one MXU pass; no accumulator scratch needed.
    acc = jnp.dot(x_ref[...], w_ref[...], preferred_element_type=jnp.float32)
    o_ref[...] = (acc + b_ref[...].astype(jnp.float32)).astype(o_ref.dtype)


def unembed_kernel_acc(x_ref, w_ref, b_ref, o_ref, acc_ref):
    # K-blocked fallback (only when a full-K tile does not fit VMEM).
    k = pl.program_id(2)

    @pl.when(k == 0)
    def _():
        acc_ref[...] = jnp.zeros_like(acc_ref)

    acc_ref[...] += jnp.dot(
        x_ref[...], w_ref[...], preferred_element_type=jnp.float32
    )

    @pl.when(k == pl.num_programs(2) - 1)
    def _():
        o_ref[...] = (acc_ref[...] + b_ref[...].astype(jnp.float32)).astype(
            o_ref.dtype
        )


# ---------------------------------------------------------------------------
# Tile selection (VMEM-budget driven, per generation)
# ---------------------------------------------------------------------------
def _select_tiles(rows, M, V, x_sz, w_sz, o_sz, budget, tm_cap=512, tn_cap=2048):
    """Returns (tm, tn, tk, k_blocked)."""

    # --- rows tile (tm) candidates ---
    if rows <= tm_cap:
        tm = _round_up(rows, 8)
    else:
        tm = next((c for c in (512, 256, 128) if c <= tm_cap and rows % c == 0),
                  min(256, tm_cap))
    tm_cands = [tm] + [c for c in (256, 128, 64, 32, 16, 8) if c < tm]

    # --- vocab tile (tn) candidates (prefer divisors of V -> no W pad, no slice) ---
    div_opts = [c for c in (2048, 1536, 1024, 768, 512, 384, 256, 128)
                if c <= tn_cap and V % c == 0]
    if div_opts:
        tn_opts = div_opts
    elif V <= tn_cap:
        tn_opts = [V]                     # full vocab dim, no pad
    else:
        tn_opts = [512, 256, 128]         # padded fallback

    def fits(tm_, tn_, tk_, blocked):
        used = 2 * (tm_ * tk_ * x_sz      # x tile (double-buffered)
                    + tk_ * tn_ * w_sz    # W tile
                    + tn_ * 4             # bias tile
                    + tm_ * tn_ * o_sz)   # output tile
        if blocked:
            used += tm_ * tn_ * 4         # f32 accumulator scratch
        return used <= budget

    # 1) Preferred: single K block (W-stationary, no accumulator).
    for tm_ in tm_cands:
        for tn_ in tn_opts:
            if fits(tm_, tn_, M, blocked=False):
                return tm_, tn_, M, False

    # 2) Fallback: block K with the accumulator kernel.
    tk_cands = [c for c in (4096, 2048, 1024, 512, 256, 128) if M % c == 0] or [512]
    for tm_ in tm_cands:
        for tk_ in tk_cands:
            for tn_ in tn_opts:
                if fits(tm_, tn_, tk_, blocked=True):
                    return tm_, tn_, tk_, True

    # 3) Last resort (tiny tiles; always fits any sane budget).
    return 8, 128, min(128, _round_up(M, 8)), True


# ---------------------------------------------------------------------------
# Wrapper
# ---------------------------------------------------------------------------
def unembed(x, W_U, b_U, *, out_dtype=None, vmem_budget_bytes=None):
    B, S, M = x.shape
    Mw, V = W_U.shape
    assert M == Mw, "d_model mismatch between x and W_U"
    rows = B * S
    out_dtype = x.dtype if out_dtype is None else jnp.dtype(out_dtype)

    # Per-generation VMEM budget (v7x: 64 MiB/TC, v5e/v6e: 128 MiB).
    try:
        info = pltpu.get_tpu_info()
        vmem_cap = int(getattr(info, "vmem_capacity_bytes", 64 * 1024 * 1024))
    except Exception:
        vmem_cap = 64 * 1024 * 1024       # conservative default, safe everywhere
    budget = (int(vmem_budget_bytes) if vmem_budget_bytes is not None
              else min(int(0.75 * vmem_cap), 96 * 1024 * 1024))
    vmem_limit = min(int(0.85 * vmem_cap), 112 * 1024 * 1024)

    x_sz = jnp.dtype(x.dtype).itemsize
    w_sz = jnp.dtype(W_U.dtype).itemsize
    o_sz = jnp.dtype(out_dtype).itemsize
    tm, tn, tk, k_blocked = _select_tiles(rows, M, V, x_sz, w_sz, o_sz, budget)

    rows_p = _round_up(rows, tm)
    V_p = _round_up(V, tn)
    K_p = _round_up(M, tk)                # == M in the single-K-block case

    # --- Operand padding: only when required; common case needs none for W_U.
    x2d = x.reshape(rows, M)
    if rows_p != rows or K_p != M:
        x2d = jnp.pad(x2d, ((0, rows_p - rows), (0, K_p - M)))
    w = W_U
    if K_p != M or V_p != V:
        # K-tail MUST stay zero-padded for reduction correctness.
        w = jnp.pad(W_U, ((0, K_p - M), (0, V_p - V)))
    b2d = b_U.reshape(1, V)
    if V_p != V:
        b2d = jnp.pad(b2d, ((0, 0), (0, V_p - V)))

    nv, nr, nk = V_p // tn, rows_p // tm, K_p // tk

    cost = pl.CostEstimate(
        flops=2 * rows * M * V,
        transcendentals=0,
        bytes_accessed=(x2d.size * x_sz + w.size * w_sz + b2d.size * 4
                        + rows_p * V_p * o_sz),
    )

    if nk == 1:
        # Single K block: vocab outer ("parallel" -> v7x megacore split),
        # rows inner; W block index (0, j) is constant over i -> W-stationary.
        out2d = pl.pallas_call(
            unembed_kernel_single,
            out_shape=jax.ShapeDtypeStruct((rows_p, V_p), out_dtype),
            grid_spec=pltpu.PrefetchScalarGridSpec(
                num_scalar_prefetch=0,
                grid=(nv, nr),
                in_specs=[
                    pl.BlockSpec((tm, K_p), lambda j, i: (i, 0)),   # x rows tile
                    pl.BlockSpec((K_p, tn), lambda j, i: (0, j)),   # W_U (stationary over i)
                    pl.BlockSpec((1, tn), lambda j, i: (0, j)),     # bias tile
                ],
                out_specs=pl.BlockSpec((tm, tn), lambda j, i: (i, j)),
            ),
            compiler_params=pltpu.CompilerParams(
                dimension_semantics=("parallel", "parallel"),
                vmem_limit_bytes=vmem_limit,
            ),
            cost_estimate=cost,
        )(x2d, w, b2d)
    else:
        out2d = pl.pallas_call(
            unembed_kernel_acc,
            out_shape=jax.ShapeDtypeStruct((rows_p, V_p), out_dtype),
            grid_spec=pltpu.PrefetchScalarGridSpec(
                num_scalar_prefetch=0,
                grid=(nv, nr, nk),
                in_specs=[
                    pl.BlockSpec((tm, tk), lambda j, i, k: (i, k)),
                    pl.BlockSpec((tk, tn), lambda j, i, k: (k, j)),
                    pl.BlockSpec((1, tn), lambda j, i, k: (0, j)),
                ],
                out_specs=pl.BlockSpec((tm, tn), lambda j, i, k: (i, j)),
                scratch_shapes=[pltpu.VMEM((tm, tn), jnp.float32)],
            ),
            compiler_params=pltpu.CompilerParams(
                dimension_semantics=("parallel", "parallel", "arbitrary"),
                vmem_limit_bytes=vmem_limit,
            ),
            cost_estimate=cost,
        )(x2d, w, b2d)

    if rows_p != rows or V_p != V:
        out2d = out2d[:rows, :V]
    return out2d.reshape(B, S, V)


if __name__ == "__main__":
    # Small config consistent with the module: d_model=32, d_vocab=256,
    # batch=2, seq(position)=8, init_range=0.02.
    B, S, d_model, d_vocab = 2, 8, 32, 256
    init_range = 0.02

    key = jax.random.PRNGKey(0)
    kx, kw = jax.random.split(key)

    x = jax.random.normal(kx, (B, S, d_model), dtype=jnp.float32)
    W_U = init_range * jax.random.normal(kw, (d_model, d_vocab), dtype=jnp.float32)
    b_U = jnp.zeros((d_vocab,), dtype=jnp.float32)

    out = jax.block_until_ready(unembed(x, W_U, b_U))
    ref = jnp.einsum("mv,bsm->bsv", W_U, x,
                     precision=jax.lax.Precision.HIGHEST) + b_U
    assert out.shape == (B, S, d_vocab)
    assert jnp.allclose(out, ref, atol=2e-2, rtol=2e-2)

    # Ragged rows (14, not a tile multiple) + non-128-multiple vocab (384)
    # + larger d_model (640), nonzero bias: exercises the padded-rows path
    # while still taking the single-K-block W-stationary kernel.
    B2, S2, M2, V2 = 2, 7, 640, 384
    k1, k2 = jax.random.split(jax.random.PRNGKey(1))
    x2 = jax.random.normal(k1, (B2, S2, M2), dtype=jnp.float32)
    W2 = init_range * jax.random.normal(k2, (M2, V2), dtype=jnp.float32)
    b2 = 0.1 * jnp.ones((V2,), dtype=jnp.float32)
    out2 = jax.block_until_ready(unembed(x2, W2, b2))
    ref2 = jnp.einsum("mv,bsm->bsv", W2, x2,
                      precision=jax.lax.Precision.HIGHEST) + b2
    assert out2.shape == (B2, S2, V2)
    assert jnp.allclose(out2, ref2, atol=2e-2, rtol=2e-2)

    # Force the K-blocked accumulator fallback by shrinking the tile budget.
    out3 = jax.block_until_ready(
        unembed(x2, W2, b2, vmem_budget_bytes=1 << 20))
    assert jnp.allclose(out3, ref2, atol=2e-2, rtol=2e-2)

    print("KERNEL_OK")
</pallas_src>

<mosaic_0001>
module attributes {stable_mosaic.version = 11 : i64} {
  func.func @unembed_kernel_single(%arg0: i32, %arg1: i32, %arg2: memref<16x32xf32, #tpu.memory_space<vmem>>, %arg3: memref<32x256xf32, #tpu.memory_space<vmem>>, %arg4: memref<1x256xf32, #tpu.memory_space<vmem>>, %arg5: memref<16x256xf32, #tpu.memory_space<vmem>>) attributes {dimension_semantics = [#tpu.dimension_semantics<parallel>, #tpu.dimension_semantics<parallel>], iteration_bounds = array<i64: 1, 1>, scalar_prefetch = 0 : i64, scratch_operands = 0 : i64, tpu.core_type = #tpu.core_type<tc>, window_params = [{transform_indices = @transform_0, window_bounds = array<i64: 16, 32>}, {transform_indices = @transform_1, window_bounds = array<i64: 32, 256>}, {transform_indices = @transform_2, window_bounds = array<i64: 1, 256>}, {transform_indices = @transform_3, window_bounds = array<i64: 16, 256>}]} {
    %c0 = arith.constant 0 : index
    %c0_0 = arith.constant 0 : index
    %0 = vector.load %arg2[%c0, %c0_0] : memref<16x32xf32, #tpu.memory_space<vmem>>, vector<16x32xf32>
    %c0_1 = arith.constant 0 : index
    %c0_2 = arith.constant 0 : index
    %1 = vector.load %arg3[%c0_1, %c0_2] : memref<32x256xf32, #tpu.memory_space<vmem>>, vector<32x256xf32>
    %cst = arith.constant dense<0.000000e+00> : vector<16x256xf32>
    %2 = tpu.matmul %0, %1, %cst {dimension_numbers = #tpu.dot_dimension_numbers<[1], [0], [0], [1], [0, 0, 1, 1], [], []>} : vector<16x32xf32>, vector<32x256xf32>, vector<16x256xf32> -> vector<16x256xf32>
    %c0_3 = arith.constant 0 : index
    %c0_4 = arith.constant 0 : index
    %3 = vector.load %arg4[%c0_3, %c0_4] : memref<1x256xf32, #tpu.memory_space<vmem>>, vector<1x256xf32>
    %4 = vector.broadcast %3 : vector<1x256xf32> to vector<16x256xf32>
    %5 = arith.addf %2, %4 : vector<16x256xf32>
    %c0_5 = arith.constant 0 : index
    %c0_6 = arith.constant 0 : index
    %6 = vector.load %arg5[%c0_5, %c0_6] : memref<16x256xf32, #tpu.memory_space<vmem>>, vector<16x256xf32>
    tpu.vector_store %arg5[%c0_5, %c0_6], %5 {strides = array<i32>} : memref<16x256xf32, #tpu.memory_space<vmem>>, vector<16x256xf32>,
    return
  }
  func.func @transform_0(%arg0: i32, %arg1: i32) -> (i32, i32) {
    %c0_i32 = arith.constant 0 : i32
    %c0_i32_0 = arith.constant 0 : i32
    return %arg1, %c0_i32 : i32, i32
  }
  func.func @transform_1(%arg0: i32, %arg1: i32) -> (i32, i32) {
    %c0_i32 = arith.constant 0 : i32
    %c0_i32_0 = arith.constant 0 : i32
    return %c0_i32, %arg0 : i32, i32
  }
  func.func @transform_2(%arg0: i32, %arg1: i32) -> (i32, i32) {
    %c0_i32 = arith.constant 0 : i32
    %c0_i32_0 = arith.constant 0 : i32
    return %c0_i32, %arg0 : i32, i32
  }
  func.func @transform_3(%arg0: i32, %arg1: i32) -> (i32, i32) {
    %c0_i32 = arith.constant 0 : i32
    return %arg1, %arg0 : i32, i32
  }
}

</mosaic_0001>

<bundles_post_ra>
// kernel: tpu_custom_call.1
= control target key start
LH: loop header
LB: loop body
LE: loop exit
PB: predicated region body
PF: predicated region fallthrough
CT: control target
= control target key end

     0   :  { %8 = vsyncpa [#allocation3], 0  ;;  %s338_s0 = inlined_call_operand.hbm [shape: f32[16,32], index: 0, kind: input, shape index: {}]   ;;  %s339_s1 = inlined_call_operand.hbm [shape: f32[32,256], index: 1, kind: input, shape index: {}]   ;;  %s340_s2 = inlined_call_operand.vmem [shape: f32[1,256], index: 2, kind: input, shape index: {}]   ;;  %s341_s3 = inlined_call_operand.hbm [shape: f32[16,256], index: 3, kind: output, shape index: {}]  }
   0x1   :  { %9 = vsyncpa [#allocation6], 0 }
   0x2   :  { %10 = vsyncpa [#allocation4], 0  ;;  %s265_s12 = smov [#allocation2]   ;;  %s193_s16 = scalar_lea.hbm %s338_s0, 256 }
   0x3   :  { %s16_s13 = sshll.u32 %s265_s12, 4  ;;  %p194_p0 = scmp.ne.s32.totalorder %s338_s0, %s193_s16  ;;  %s17_s13 = int_to_ptr.vmem [resolvable:$true] %s16_s13 }
   0x4   :  { %p197_p1 = scmp.lt.u32.totalorder %s193_s16, %s338_s0 }
   0x6   :  { %p199_p2 = pnand %p197_p1, %p194_p0 }
   0x8   :  { %202 = shalt.err (!%p199_p2)
}
   0x9   :  { %s203_s21 = scalar_lea.vmem %s17_s13, 256  ;;  %p208_p4 = scmp.lt.s32.totalorder %s17_s13, %s17_s13 }
   0xa   :  { %p204_p3 = scmp.ne.s32.totalorder %s17_s13, %s203_s21  ;;  %p209_p5 = scmp.lt.s32.totalorder %s203_s21, %s203_s21 }
   0xc   :  { %p210_p6 = por %p209_p5, %p208_p4 }
   0xe   :  { %p211_p7 = pnand %p210_p6, %p204_p3 }
  0x10   :  { %214 = shalt.err (!%p211_p7)
}
  0x11   :  { %s266_s22 = smov 128   ;;  %s267_s23 = smov 8  }
  0x12   :  { %22 = dma.hbm_to_vmem [thread:$0]  %s338_s0, 256, %s17_s13, [#allocation3], %s266_s22, %s266_s22, %s267_s23  }
  0x13   :  { %s268_s26 = smov [#allocation5]   ;;  %s215_s30 = scalar_lea.hbm %s339_s1, 1024 }
  0x14   :  { %s28_s27 = sshll.u32 %s268_s26, 4  ;;  %p216_p8 = scmp.ne.s32.totalorder %s339_s1, %s215_s30  ;;  %s29_s27 = int_to_ptr.vmem [resolvable:$true] %s28_s27 }
  0x15   :  { %p219_p9 = scmp.lt.u32.totalorder %s215_s30, %s339_s1 }
  0x17   :  { %p221_p10 = pnand %p219_p9, %p216_p8 }
  0x19   :  { %224 = shalt.err (!%p221_p10)
}
  0x1a   :  { %s225_s8 = scalar_lea.vmem %s29_s27, 1024  ;;  %p230_p12 = scmp.lt.s32.totalorder %s29_s27, %s29_s27 }
  0x1b   :  { %p226_p11 = scmp.ne.s32.totalorder %s29_s27, %s225_s8  ;;  %p231_p13 = scmp.lt.s32.totalorder %s225_s8, %s225_s8 }
  0x1d   :  { %p232_p0 = por %p231_p13, %p230_p12 }
  0x1f   :  { %p233_p1 = pnand %p232_p0, %p226_p11 }
  0x21   :  { %236 = shalt.err (!%p233_p1)
}
  0x22   :  { %s269_s0 = smov 256   ;;  %s270_s9 = smov 16  }
  0x23   :  { %34 = dma.hbm_to_vmem [thread:$0]  %s339_s1, 1024, %s29_s27, [#allocation6], %s269_s0, %s269_s0, %s270_s9  }
  0x24   :  { %259 = dma.done.wait [#allocation3], 256  }
  0x25   :  { %260 = vsyncadd [#allocation3], 4294967040 }
  0x26   :  { %261 = dma.done.wait [#allocation6], 1024  }
  0x27   :  { %262 = vsyncadd [#allocation6], 4294966272  ;;  %v271_v0 = vmov 0.0   ;;  %v46_v1 = vld [vmem:[#allocation5 + $0x8] sm:$0xff]  ;;  %v48_v2 = vld [vmem:[#allocation5 + $0x18] sm:$0xff]  ;;  %vm65_vm0 = vcmask 261120   ;;  %v55_v15 = vlaneseq }
  0x28   :  { %136 = vmatprep.mubr.f32.mxu0 %v271_v0  ;;  %142 = vmatprep.mubr.f32.mxu1 %v271_v0  ;;  %v45_v3 = vld [vmem:[#allocation5] sm:$0xff]  ;;  %v173_v4 = vpack.c.bf16 %v48_v2, %v46_v1  ;;  %v47_v5 = vld [vmem:[#allocation5 + $0x10] sm:$0xff]  ;;  %v50_v6 = vld [vmem:[#allocation5 + $0x28] sm:$0xff]  ;;  %s272_s13 = smov [#allocation7]  }
  0x29   :  { %v52_v7 = vld [vmem:[#allocation5 + $0x38] sm:$0xff]  ;;  %v175_v8 = vpack.c.bf16 %v47_v5, %v45_v3  ;;  %v49_v10 = vld [vmem:[#allocation5 + $0x20] sm:$0xff]  ;;  %v51_v11 = vld [vmem:[#allocation5 + $0x30] sm:$0xff]  ;;  %v56_v16 = vshrl.u32 %v55_v15, 7  ;;  %s158_s14 = sshll.u32 %s272_s13, 4  ;;  %s159_s14 = int_to_ptr.vmem [resolvable:$true] %s158_s14 }
  0x2a   :  { %v177_v9 = vpack.c.bf16 %v52_v7, %v50_v6  ;;  %174 = vmatprep.subr.bf16.mxu0 %v173_v4  ;;  %181 = vmatprep.subr.bf16.mxu1 %v173_v4  ;;  %v179_v12 = vpack.c.bf16 %v51_v11, %v49_v10  ;;  %v43_v13 = vld [vmem:[#allocation2] sm:$0xff]  ;;  %v44_v14 = vld [vmem:[#allocation2 + $0x8] sm:$0xff]  ;;  %s237_s15 = scalar_lea.vmem %s159_s14, 512  ;;  %p242_p3 = scmp.lt.s32.totalorder %s159_s14, %s159_s14 }
  0x2b   :  { %176 = vmatpush1.bf16.msra.mxu0 %v175_v8  ;;  %183 = vmatpush1.bf16.msra.mxu1 %v175_v8  ;;  %v57_v17 = vsub.s32 0, %v56_v16  ;;  %v53_v18 = vld [vmem:[%s340_s2] sm:$0x3]  ;;  %v61_v19 = vsub.s32 1, %v56_v16  ;;  %p238_p2 = scmp.ne.s32.totalorder %s159_s14, %s237_s15  ;;  %p243_p4 = scmp.lt.s32.totalorder %s237_s15, %s237_s15 }
  0x2c   :  { %178 = vmatprep.subr.bf16.mxu0 %v177_v9  ;;  %182 = vmatprep.subr.bf16.mxu1 %v177_v9 }
  0x2d   :  { %v58_v20 = vrot.slane %v53_v18, %v57_v17  ;;  %v62_v21 = vrot.slane %v53_v18, %v61_v19  ;;  %p244_p5 = por %p243_p4, %p242_p3 }
  0x2f   :  { %180 = vmatpush1.bf16.msra.mxu0 %v179_v12  ;;  %184 = vmatpush1.bf16.msra.mxu1 %v179_v12  ;;  %p245_p6 = pnand %p244_p5, %p238_p2 }
  0x32   :  { %171 = vmatmul.mubr.msk.f32.vlgmr.msra.gmra.mrb[0].mxu0 %vm65_vm0, %v43_v13  ;;  %172 = vmatmul.mubr.msk.f32.vlgmr.msra.gmra.mrb[0].mxu1 %vm65_vm0, %v44_v14 }
 0x105   :  { %v138_v22 = vpop.f32.mrb[0].mxu0  ;;  %v144_v23 = vpop.f32.mrb[0].mxu1 }
 0x106   :  { %v139_v24 = vadd.f32 %v138_v22, %v58_v20  ;;  %v145_v25 = vadd.f32 %v144_v23, %v58_v20  ;;  %v140_v26 = vpop.f32.mrb[1].mxu0  ;;  %v146_v27 = vpop.f32.mrb[1].mxu1 }
 0x107   :  { %v141_v28 = vadd.f32 %v140_v26, %v62_v21  ;;  %v147_v29 = vadd.f32 %v146_v27, %v62_v21 }
 0x108   :  { %149 = vst [vmem:[#allocation7] sm:$0xff] %v139_v24  ;;  %151 = vst [vmem:[#allocation7 + $0x10] sm:$0xff] %v145_v25 }
 0x109   :  { %150 = vst [vmem:[#allocation7 + $0x8] sm:$0xff] %v141_v28  ;;  %152 = vst [vmem:[#allocation7 + $0x18] sm:$0xff] %v147_v29 }
 0x10a   :  { %248 = shalt.err (!%p245_p6)
}
 0x10b   :  { %s249_s17 = scalar_lea.hbm %s341_s3, 512 }
 0x10c   :  { %p250_p7 = scmp.ne.s32.totalorder %s341_s3, %s249_s17  ;;  %p253_p8 = scmp.lt.u32.totalorder %s249_s17, %s341_s3 }
 0x10e   :  { %p255_p9 = pnand %p253_p8, %p250_p7 }
 0x110   :  { %258 = shalt.err (!%p255_p9)
}
 0x111   :  { %164 = dma.vmem_to_hbm [thread:$0]  %s159_s14, 512, %s341_s3, [#allocation4], %s269_s0, %s269_s0, %s270_s9  }
 0x112   :  { %263 = dma.done.wait [#allocation4], 512  }
 0x113   :  { %264 = vsyncadd [#allocation4], 4294966784 }
 0x114   :  { %168 = vsyncpa [#allocation3], 1 }
 0x115   :  { %169 = vsyncpa [#allocation6], 1 }
 0x116   :  { %170 = vsyncpa [#allocation4], 1 }

</bundles_post_ra>
